<compile_context>
chip_gen: v7x
topology: tpu7x:2x2x1
jax: 0.10.0
libtpu: 0.0.40
codegen_flags: <defaults>
</compile_context>

<pallas_src>
import jax
import jax.numpy as jnp
from jax.experimental import pallas as pl
from jax.experimental.pallas import tpu as pltpu

_BN_EPS = 1e-5


# -----------------------------------------------------------------------------
# Fused kernel: [conv3x3 s2 + BN + ReLU] -> [conv3x3 s1 + BN + ReLU]
# -----------------------------------------------------------------------------
def _double_conv2_kernel(xk_ref, w1_ref, s1_ref, b1_ref,
                         w2_ref, s2_ref, b2_ref, o_ref):
    # xk_ref: (Ho, 3*N*W*Ci)  f32  K-fused stride-2 row phases (lane-dense)
    # w1_ref: (3*N*W*Ci, N*Wo*C)  bf16 banded block-diag weights (stride-2,
    #          W-pad and batch folded in), kernel rows stacked along K
    # w2_ref: (3*N*Wo*C, N*Wo*C)  bf16 banded block-diag weights (stride-1)
    # s*/b*:  (1, N*Wo*C)  f32 folded-BN scale/bias, tiled over (N, Wo)
    # o_ref:  (Ho, N*Wo*C) f32 lane-dense output lines
    Ho, L2 = o_ref.shape

    # ---- stage 1: one fat MXU push (M=Ho, K=3*N*W*Ci, N=N*Wo*C) -------------
    acc1 = jnp.dot(xk_ref[...].astype(jnp.bfloat16), w1_ref[...],
                   preferred_element_type=jnp.float32)
    y1 = jnp.maximum(acc1 * s1_ref[...] + b1_ref[...], 0.0)      # BN(eval)+ReLU

    # ---- stage 2: vertical taps via sublane roll (XLU) + zero-mask halo -----
    # y1 stays entirely in vregs; no VMEM scratch, no misaligned sublane slices.
    row = jax.lax.broadcasted_iota(jnp.int32, (Ho, L2), 0)
    y_m1 = jnp.where(row == 0, 0.0, pltpu.roll(y1, 1, 0))        # y1[h-1], top pad
    y_p1 = jnp.where(row == Ho - 1, 0.0, pltpu.roll(y1, Ho - 1, 0))  # y1[h+1], bottom pad
    yk = jnp.concatenate([y_m1, y1, y_p1], axis=-1).astype(jnp.bfloat16)

    acc2 = jnp.dot(yk, w2_ref[...], preferred_element_type=jnp.float32)
    y2 = jnp.maximum(acc2 * s2_ref[...] + b2_ref[...], 0.0)      # BN(eval)+ReLU
    o_ref[...] = y2.astype(o_ref.dtype)


# -----------------------------------------------------------------------------
# Weight preprocessing (done once, outside the kernel)
# -----------------------------------------------------------------------------
def _banded_conv_weights(w_hwio, w_in, stride):
    """Fold the W axis of a 3x3 (pad=1) conv into 3 banded matrices.

    Returns (3, w_in*Ci, w_out*Co): for an activation row laid out as
    row[w*Ci + ci], `row @ wt[kh]` is the conv partial sum for kernel row kh
    in the lane-dense layout out[wo*Co + co].  Taps outside [0, w_in)
    (the W padding) are zero rows of the band.
    """
    _, _, ci, co = w_hwio.shape
    w_out = (w_in - 1) // stride + 1
    wi_rows = jnp.arange(w_in)
    wo = jnp.arange(w_out)
    mats = []
    for kh in range(3):
        m = jnp.zeros((w_in * ci, w_out * co), jnp.float32)
        for kw in range(3):
            wi = stride * wo + kw - 1                      # input col per out col
            valid = (wi >= 0) & (wi < w_in)
            onehot = (wi_rows[:, None] == wi[None, :]) & valid[None, :]
            contrib = jnp.einsum("iw,cd->icwd", onehot.astype(jnp.float32),
                                 w_hwio[kh, kw].astype(jnp.float32))
            m = m + contrib.reshape(w_in * ci, w_out * co)
        mats.append(m)
    return jnp.stack(mats)


def _fold_bn(p):
    scale = p["gamma"] / jnp.sqrt(p["var"] + _BN_EPS)
    bias = p["beta"] - p["mean"] * scale
    return scale, bias


def prepare_kernel_params(params, N, W):
    """Banded + block-diagonal (over batch) bf16 conv weights, stacked along K,
    plus folded-BN scale/bias rows in the lane-dense batch-in-lanes layout."""
    p1, p2 = params
    Wo = (W - 1) // 2 + 1
    eye_n = jnp.eye(N, dtype=jnp.float32)

    def band_blockdiag_kstack(w_hwio, w_in, stride):
        b = _banded_conv_weights(w_hwio, w_in, stride)          # (3, K, No)
        bd = jnp.stack([jnp.kron(eye_n, b[kh]) for kh in range(3)])
        return bd.reshape(-1, bd.shape[-1])                     # (3*N*K, N*No)

    w1k = band_blockdiag_kstack(p1["w"], W, 2).astype(jnp.bfloat16)
    w2k = band_blockdiag_kstack(p2["w"], Wo, 1).astype(jnp.bfloat16)
    s1, b1 = _fold_bn(p1)
    s2, b2 = _fold_bn(p2)
    tile_row = lambda v: jnp.tile(v, N * Wo)[None, :].astype(jnp.float32)
    return dict(w1k=w1k, s1=tile_row(s1), b1=tile_row(b1),
                w2k=w2k, s2=tile_row(s2), b2=tile_row(b2))


# -----------------------------------------------------------------------------
# Forward (NCHW in / NCHW out, like the PyTorch module)
# -----------------------------------------------------------------------------
@jax.jit
def double_conv2_forward(x_nchw, kp):
    N, Ci, H, W = x_nchw.shape
    Ho = (H - 1) // 2 + 1
    Wo = (W - 1) // 2 + 1
    L1 = N * W * Ci                      # stage-1 line width (128 here)
    L2 = kp["s1"].shape[1]               # N*Wo*C             (128 here)
    C = L2 // (N * Wo)

    # Layout glue (plain XLA; callers that can supply/consume NHWC or the line
    # layout directly can drop these transposes):
    # batch-in-lanes line layout (H, N*W*Ci), zero row top/bottom, then ONE
    # K-fused slab whose row h is [pad_x[2h] | pad_x[2h+1] | pad_x[2h+2]].
    x = jnp.transpose(x_nchw, (2, 0, 3, 1)).reshape(H, L1)
    xp = jnp.pad(x, ((1, 1), (0, 0)))
    xk = jnp.concatenate([xp[kh:kh + 2 * Ho - 1:2] for kh in range(3)], axis=-1)

    out_lines = pl.pallas_call(
        _double_conv2_kernel,
        out_shape=jax.ShapeDtypeStruct((Ho, L2), jnp.float32),
        grid=(1,),                               # single step: no per-image grid overhead
        in_specs=[
            pl.BlockSpec((Ho, 3 * L1), lambda i: (0, 0)),
            pl.BlockSpec((3 * L1, L2), lambda i: (0, 0)),
            pl.BlockSpec((1, L2), lambda i: (0, 0)),
            pl.BlockSpec((1, L2), lambda i: (0, 0)),
            pl.BlockSpec((3 * L2, L2), lambda i: (0, 0)),
            pl.BlockSpec((1, L2), lambda i: (0, 0)),
            pl.BlockSpec((1, L2), lambda i: (0, 0)),
        ],
        out_specs=pl.BlockSpec((Ho, L2), lambda i: (0, 0)),
        compiler_params=pltpu.CompilerParams(
            dimension_semantics=("arbitrary",),
            vmem_limit_bytes=8 * 1024 * 1024,
        ),
    )(xk, kp["w1k"], kp["s1"], kp["b1"], kp["w2k"], kp["s2"], kp["b2"])

    # lane-dense slab (Ho, N*Wo*C) -> NCHW
    return jnp.transpose(out_lines.reshape(Ho, N, Wo, C), (1, 3, 0, 2))


# -----------------------------------------------------------------------------
# Parameter init + pure-JAX reference (for correctness check)
# -----------------------------------------------------------------------------
def init_double_conv2_params(key, in_channel, out_channel):
    params = []
    cin = in_channel
    for _ in range(2):
        key, kw, kg, kb, km, kv = jax.random.split(key, 6)
        params.append(dict(
            w=0.1 * jax.random.normal(kw, (3, 3, cin, out_channel), jnp.float32),
            gamma=1.0 + 0.1 * jax.random.normal(kg, (out_channel,), jnp.float32),
            beta=0.1 * jax.random.normal(kb, (out_channel,), jnp.float32),
            mean=0.1 * jax.random.normal(km, (out_channel,), jnp.float32),
            var=jax.random.uniform(kv, (out_channel,), jnp.float32, 0.5, 1.5),
        ))
        cin = out_channel
    return params


def _reference_forward(x_nchw, params):
    x = jnp.transpose(x_nchw, (0, 2, 3, 1))
    for p, stride in zip(params, (2, 1)):
        y = jax.lax.conv_general_dilated(
            x, p["w"], window_strides=(stride, stride),
            padding=((1, 1), (1, 1)),
            dimension_numbers=("NHWC", "HWIO", "NHWC"))
        scale, bias = _fold_bn(p)
        x = jnp.maximum(y * scale + bias, 0.0)
    return jnp.transpose(x, (0, 3, 1, 2))


if __name__ == "__main__":
    key = jax.random.PRNGKey(0)
    k_x, k_p = jax.random.split(key)

    in_channel, out_channel = 4, 8
    N, H, W = 2, 16, 16

    x = jax.random.normal(k_x, (N, in_channel, H, W), jnp.float32)
    params = init_double_conv2_params(k_p, in_channel, out_channel)
    kp = prepare_kernel_params(params, N, W)

    out = double_conv2_forward(x, kp)
    out = jax.block_until_ready(out)

    ref = _reference_forward(x, params)
    Ho, Wo = (H - 1) // 2 + 1, (W - 1) // 2 + 1
    assert out.shape == (N, out_channel, Ho, Wo), out.shape
    max_err = float(jnp.max(jnp.abs(out - ref)))
    # Conv weights / activations are intentionally bf16 on the MXU (f32 acc),
    # hence the loose tolerance vs the f32 reference.
    assert jnp.allclose(out, ref, atol=5e-2, rtol=5e-2), (
        f"mismatch vs reference, max abs err = {max_err}")
    print("KERNEL_OK")
</pallas_src>

<mosaic_0001>
module attributes {stable_mosaic.version = 11 : i64} {
  func.func @_double_conv2_kernel(%arg0: i32, %arg1: memref<8x384xf32, #tpu.memory_space<vmem>>, %arg2: memref<384x128xbf16, #tpu.memory_space<vmem>>, %arg3: memref<1x128xf32, #tpu.memory_space<vmem>>, %arg4: memref<1x128xf32, #tpu.memory_space<vmem>>, %arg5: memref<384x128xbf16, #tpu.memory_space<vmem>>, %arg6: memref<1x128xf32, #tpu.memory_space<vmem>>, %arg7: memref<1x128xf32, #tpu.memory_space<vmem>>, %arg8: memref<8x128xf32, #tpu.memory_space<vmem>>) attributes {dimension_semantics = [#tpu.dimension_semantics<arbitrary>], iteration_bounds = array<i64: 1>, scalar_prefetch = 0 : i64, scratch_operands = 0 : i64, tpu.core_type = #tpu.core_type<tc>, window_params = [{pipeline_mode = #tpu.pipeline_mode<synchronous>, transform_indices = @transform_0, window_bounds = array<i64: 8, 384>}, {pipeline_mode = #tpu.pipeline_mode<synchronous>, transform_indices = @transform_1, window_bounds = array<i64: 384, 128>}, {pipeline_mode = #tpu.pipeline_mode<synchronous>, transform_indices = @transform_2, window_bounds = array<i64: 1, 128>}, {pipeline_mode = #tpu.pipeline_mode<synchronous>, transform_indices = @transform_3, window_bounds = array<i64: 1, 128>}, {pipeline_mode = #tpu.pipeline_mode<synchronous>, transform_indices = @transform_4, window_bounds = array<i64: 384, 128>}, {pipeline_mode = #tpu.pipeline_mode<synchronous>, transform_indices = @transform_5, window_bounds = array<i64: 1, 128>}, {pipeline_mode = #tpu.pipeline_mode<synchronous>, transform_indices = @transform_6, window_bounds = array<i64: 1, 128>}, {pipeline_mode = #tpu.pipeline_mode<synchronous>, transform_indices = @transform_7, window_bounds = array<i64: 8, 128>}]} {
    %c0 = arith.constant 0 : index
    %c0_0 = arith.constant 0 : index
    %0 = vector.load %arg1[%c0, %c0_0] : memref<8x384xf32, #tpu.memory_space<vmem>>, vector<8x384xf32>
    %1 = arith.truncf %0 : vector<8x384xf32> to vector<8x384xbf16>
    %c0_1 = arith.constant 0 : index
    %c0_2 = arith.constant 0 : index
    %2 = vector.load %arg2[%c0_1, %c0_2] : memref<384x128xbf16, #tpu.memory_space<vmem>>, vector<384x128xbf16>
    %cst = arith.constant dense<0.000000e+00> : vector<8x128xf32>
    %3 = tpu.matmul %1, %2, %cst {dimension_numbers = #tpu.dot_dimension_numbers<[1], [0], [0], [1], [0, 0, 1, 1], [], []>} : vector<8x384xbf16>, vector<384x128xbf16>, vector<8x128xf32> -> vector<8x128xf32>
    %c0_3 = arith.constant 0 : index
    %c0_4 = arith.constant 0 : index
    %4 = vector.load %arg3[%c0_3, %c0_4] : memref<1x128xf32, #tpu.memory_space<vmem>>, vector<1x128xf32>
    %5 = vector.broadcast %4 : vector<1x128xf32> to vector<8x128xf32>
    %6 = arith.mulf %3, %5 : vector<8x128xf32>
    %c0_5 = arith.constant 0 : index
    %c0_6 = arith.constant 0 : index
    %7 = vector.load %arg4[%c0_5, %c0_6] : memref<1x128xf32, #tpu.memory_space<vmem>>, vector<1x128xf32>
    %8 = vector.broadcast %7 : vector<1x128xf32> to vector<8x128xf32>
    %9 = arith.addf %6, %8 : vector<8x128xf32>
    %cst_7 = arith.constant 0.000000e+00 : f32
    %10 = vector.broadcast %cst_7 : f32 to vector<8x128xf32>
    %11 = arith.maximumf %9, %10 : vector<8x128xf32>
    %12 = tpu.iota {dimensions = array<i32: 0>} : vector<8x128xi32>
    %c0_i32 = arith.constant 0 : i32
    %13 = vector.broadcast %c0_i32 : i32 to vector<8x128xi32>
    %14 = arith.cmpi eq, %12, %13 : vector<8x128xi32>
    %c1_i32 = arith.constant 1 : i32
    %15 = tpu.dynamic_rotate %11 by %c1_i32 dim 0 : vector<8x128xf32>, i32 -> vector<8x128xf32>
    %cst_8 = arith.constant 0.000000e+00 : f32
    %16 = vector.broadcast %cst_8 : f32 to vector<8x128xf32>
    %17 = arith.select %14, %16, %15 : vector<8x128xi1>, vector<8x128xf32>
    %c7_i32 = arith.constant 7 : i32
    %18 = vector.broadcast %c7_i32 : i32 to vector<8x128xi32>
    %19 = arith.cmpi eq, %12, %18 : vector<8x128xi32>
    %c7_i32_9 = arith.constant 7 : i32
    %20 = tpu.dynamic_rotate %11 by %c7_i32_9 dim 0 : vector<8x128xf32>, i32 -> vector<8x128xf32>
    %cst_10 = arith.constant 0.000000e+00 : f32
    %21 = vector.broadcast %cst_10 : f32 to vector<8x128xf32>
    %22 = arith.select %19, %21, %20 : vector<8x128xi1>, vector<8x128xf32>
    %23 = tpu.concatenate %17, %11, %22 in 1 : vector<8x128xf32>, vector<8x128xf32>, vector<8x128xf32> -> vector<8x384xf32>
    %24 = arith.truncf %23 : vector<8x384xf32> to vector<8x384xbf16>
    %c0_11 = arith.constant 0 : index
    %c0_12 = arith.constant 0 : index
    %25 = vector.load %arg5[%c0_11, %c0_12] : memref<384x128xbf16, #tpu.memory_space<vmem>>, vector<384x128xbf16>
    %cst_13 = arith.constant dense<0.000000e+00> : vector<8x128xf32>
    %26 = tpu.matmul %24, %25, %cst_13 {dimension_numbers = #tpu.dot_dimension_numbers<[1], [0], [0], [1], [0, 0, 1, 1], [], []>} : vector<8x384xbf16>, vector<384x128xbf16>, vector<8x128xf32> -> vector<8x128xf32>
    %c0_14 = arith.constant 0 : index
    %c0_15 = arith.constant 0 : index
    %27 = vector.load %arg6[%c0_14, %c0_15] : memref<1x128xf32, #tpu.memory_space<vmem>>, vector<1x128xf32>
    %28 = vector.broadcast %27 : vector<1x128xf32> to vector<8x128xf32>
    %29 = arith.mulf %26, %28 : vector<8x128xf32>
    %c0_16 = arith.constant 0 : index
    %c0_17 = arith.constant 0 : index
    %30 = vector.load %arg7[%c0_16, %c0_17] : memref<1x128xf32, #tpu.memory_space<vmem>>, vector<1x128xf32>
    %31 = vector.broadcast %30 : vector<1x128xf32> to vector<8x128xf32>
    %32 = arith.addf %29, %31 : vector<8x128xf32>
    %cst_18 = arith.constant 0.000000e+00 : f32
    %33 = vector.broadcast %cst_18 : f32 to vector<8x128xf32>
    %34 = arith.maximumf %32, %33 : vector<8x128xf32>
    %c0_19 = arith.constant 0 : index
    %c0_20 = arith.constant 0 : index
    %35 = vector.load %arg8[%c0_19, %c0_20] : memref<8x128xf32, #tpu.memory_space<vmem>>, vector<8x128xf32>
    tpu.vector_store %arg8[%c0_19, %c0_20], %34 {strides = array<i32>} : memref<8x128xf32, #tpu.memory_space<vmem>>, vector<8x128xf32>,
    return
  }
  func.func @transform_0(%arg0: i32) -> (i32, i32) {
    %c0_i32 = arith.constant 0 : i32
    %c0_i32_0 = arith.constant 0 : i32
    %c0_i32_1 = arith.constant 0 : i32
    return %c0_i32, %c0_i32_0 : i32, i32
  }
  func.func @transform_1(%arg0: i32) -> (i32, i32) {
    %c0_i32 = arith.constant 0 : i32
    %c0_i32_0 = arith.constant 0 : i32
    %c0_i32_1 = arith.constant 0 : i32
    return %c0_i32, %c0_i32_0 : i32, i32
  }
  func.func @transform_2(%arg0: i32) -> (i32, i32) {
    %c0_i32 = arith.constant 0 : i32
    %c0_i32_0 = arith.constant 0 : i32
    %c0_i32_1 = arith.constant 0 : i32
    return %c0_i32, %c0_i32_0 : i32, i32
  }
  func.func @transform_3(%arg0: i32) -> (i32, i32) {
    %c0_i32 = arith.constant 0 : i32
    %c0_i32_0 = arith.constant 0 : i32
    %c0_i32_1 = arith.constant 0 : i32
    return %c0_i32, %c0_i32_0 : i32, i32
  }
  func.func @transform_4(%arg0: i32) -> (i32, i32) {
    %c0_i32 = arith.constant 0 : i32
    %c0_i32_0 = arith.constant 0 : i32
    %c0_i32_1 = arith.constant 0 : i32
    return %c0_i32, %c0_i32_0 : i32, i32
  }
  func.func @transform_5(%arg0: i32) -> (i32, i32) {
    %c0_i32 = arith.constant 0 : i32
    %c0_i32_0 = arith.constant 0 : i32
    %c0_i32_1 = arith.constant 0 : i32
    return %c0_i32, %c0_i32_0 : i32, i32
  }
  func.func @transform_6(%arg0: i32) -> (i32, i32) {
    %c0_i32 = arith.constant 0 : i32
    %c0_i32_0 = arith.constant 0 : i32
    %c0_i32_1 = arith.constant 0 : i32
    return %c0_i32, %c0_i32_0 : i32, i32
  }
  func.func @transform_7(%arg0: i32) -> (i32, i32) {
    %c0_i32 = arith.constant 0 : i32
    %c0_i32_0 = arith.constant 0 : i32
    %c0_i32_1 = arith.constant 0 : i32
    return %c0_i32, %c0_i32_0 : i32, i32
  }
}

</mosaic_0001>

<bundles_post_ra>
// kernel: double_conv2_forward.1
= control target key start
LH: loop header
LB: loop body
LE: loop exit
PB: predicated region body
PF: predicated region fallthrough
CT: control target
= control target key end

     0   :  { %v843_v1 = vmov 0.0   ;;  %vm844_vm0 = vmmov 0   ;;  %v322_v58 = vlaneseq  ;;  %s1073_s1 = inlined_call_operand.vmem [shape: bf16[384,128], index: 1, kind: input, shape index: {}]   ;;  %s1074_s0 = inlined_call_operand.vmem [shape: f32[8,384], index: 0, kind: input, shape index: {}]   ;;  %s1075_s4 = inlined_call_operand.vmem [shape: bf16[384,128], index: 4, kind: input, shape index: {}]   ;;  %s1076_s2 = inlined_call_operand.vmem [shape: f32[1,128], index: 2, kind: input, shape index: {}]   ;;  %s1077_s3 = inlined_call_operand.vmem [shape: f32[1,128], index: 3, kind: input, shape index: {}]   ;;  %s1078_s5 = inlined_call_operand.vmem [shape: f32[1,128], index: 5, kind: input, shape index: {}]   ;;  %s1079_s6 = inlined_call_operand.vmem [shape: f32[1,128], index: 6, kind: input, shape index: {}]   ;;  %s1080_s7 = inlined_call_operand.vmem [shape: f32[8,128], index: 7, kind: output, shape index: {}]  }
   0x1   :  { %v795_v0 = vld [vmem:[%s1073_s1 + $0x40] sm:$0xff]   ;;  %753 = vmatprep.subr.bf16.mxu1 %v843_v1  ;;  %769 = vmatprep.mubr.msk.bf16.mxu1 %vm844_vm0, %v843_v1  ;;  %v798_v4 = vld [vmem:[%s1073_s1 + $0x48] sm:$0xff]   ;;  %v801_v7 = vld [vmem:[%s1073_s1 + $0x50] sm:$0xff]  }
   0x2   :  { %v796_v2 = vld [vmem:[%s1073_s1] sm:$0xff]   ;;  %691 = vmatprep.subr.bf16.mxu0 %v795_v0  ;;  %v799_v5 = vld [vmem:[%s1073_s1 + $0x8] sm:$0xff]   ;;  %v802_v8 = vld [vmem:[%s1073_s1 + $0x10] sm:$0xff]  }
   0x3   :  { %v797_v3 = vld [vmem:[%s1073_s1 + $0x80] sm:$0xff]   ;;  %692 = vmatpush3.bf16.msra.mxu0 %v796_v2  ;;  %v800_v6 = vld [vmem:[%s1073_s1 + $0x88] sm:$0xff]   ;;  %v803_v9 = vld [vmem:[%s1073_s1 + $0x90] sm:$0xff]  }
   0x4   :  { %754 = vmatpush3.bf16.msra.mxu1 %v797_v3  ;;  %693 = vmatprep.subr.bf16.mxu0 %v798_v4  ;;  %v804_v10 = vld [vmem:[%s1073_s1 + $0x58] sm:$0xff]   ;;  %v807_v13 = vld [vmem:[%s1073_s1 + $0x60] sm:$0xff]   ;;  %v810_v16 = vld [vmem:[%s1073_s1 + $0x68] sm:$0xff]   ;;  %v323_v4 = vshrl.u32 %v322_v58, 7 }
   0x5   :  { %755 = vmatprep.subr.bf16.mxu1 %v843_v1  ;;  %v805_v11 = vld [vmem:[%s1073_s1 + $0x18] sm:$0xff]   ;;  %v808_v14 = vld [vmem:[%s1073_s1 + $0x20] sm:$0xff]   ;;  %v811_v17 = vld [vmem:[%s1073_s1 + $0x28] sm:$0xff]  }
   0x6   :  { %v806_v12 = vld [vmem:[%s1073_s1 + $0x98] sm:$0xff]   ;;  %v809_v15 = vld [vmem:[%s1073_s1 + $0xa0] sm:$0xff]   ;;  %v812_v18 = vld [vmem:[%s1073_s1 + $0xa8] sm:$0xff]   ;;  %vm689_vm1 = vcmp.ne.s32.totalorder %v323_v4, 0  ;;  %vm690_vm2 = vcmp.ne.s32.totalorder %v323_v4, 7 }
   0x7   :  { %694 = vmatpush3.bf16.msra.mxu0 %v799_v5  ;;  %v813_v19 = vld [vmem:[%s1073_s1 + $0x70] sm:$0xff]   ;;  %v816_v22 = vld [vmem:[%s1073_s1 + $0x78] sm:$0xff]   ;;  %v28_v23 = vld [vmem:[%s1074_s0 + $0x8] sm:$0xff] }
   0x8   :  { %756 = vmatpush3.bf16.msra.mxu1 %v800_v6  ;;  %695 = vmatprep.subr.bf16.mxu0 %v801_v7  ;;  %v814_v20 = vld [vmem:[%s1073_s1 + $0x30] sm:$0xff]   ;;  %v817_v24 = vld [vmem:[%s1073_s1 + $0x38] sm:$0xff]   ;;  %v31_v25 = vpack.c.bf16 %v28_v23, %v28_v23  ;;  %v27_v27 = vld [vmem:[%s1074_s0] sm:$0xff] }
   0x9   :  { %757 = vmatprep.subr.bf16.mxu1 %v843_v1  ;;  %v815_v21 = vld [vmem:[%s1073_s1 + $0xb0] sm:$0xff]   ;;  %v818_v26 = vld [vmem:[%s1073_s1 + $0xb8] sm:$0xff]   ;;  %v819_v29 = vld [vmem:[%s1075_s4 + $0x40] sm:$0xff]   ;;  %v30_v30 = vpack.c.bf16 %v27_v27, %v27_v27 }
   0xa   :  { %257 = vmatprep.mubr.bf16.mxu0 %v31_v25  ;;  %v29_v28 = vld [vmem:[%s1074_s0 + $0x10] sm:$0xff]  ;;  %v820_v31 = vld [vmem:[%s1075_s4] sm:$0xff]   ;;  %v822_v34 = vld [vmem:[%s1075_s4 + $0x48] sm:$0xff]  }
   0xb   :  { %696 = vmatpush3.bf16.msra.mxu0 %v802_v8  ;;  %v32_v32 = vpack.c.bf16 %v29_v28, %v29_v28  ;;  %v821_v33 = vld [vmem:[%s1075_s4 + $0x80] sm:$0xff]   ;;  %v823_v35 = vld [vmem:[%s1075_s4 + $0x8] sm:$0xff]   ;;  %v825_v37 = vld [vmem:[%s1075_s4 + $0x50] sm:$0xff]  }
   0xc   :  { %758 = vmatpush3.bf16.msra.mxu1 %v803_v9  ;;  %697 = vmatprep.subr.bf16.mxu0 %v804_v10  ;;  %v824_v36 = vld [vmem:[%s1075_s4 + $0x88] sm:$0xff]   ;;  %v826_v38 = vld [vmem:[%s1075_s4 + $0x10] sm:$0xff]   ;;  %v828_v40 = vld [vmem:[%s1075_s4 + $0x58] sm:$0xff]  }
   0xd   :  { %759 = vmatprep.subr.bf16.mxu1 %v843_v1  ;;  %v827_v39 = vld [vmem:[%s1075_s4 + $0x90] sm:$0xff]   ;;  %v829_v41 = vld [vmem:[%s1075_s4 + $0x18] sm:$0xff]   ;;  %v831_v43 = vld [vmem:[%s1075_s4 + $0x60] sm:$0xff]  }
   0xe   :  { %v830_v42 = vld [vmem:[%s1075_s4 + $0x98] sm:$0xff]   ;;  %v832_v44 = vld [vmem:[%s1075_s4 + $0x20] sm:$0xff]   ;;  %v834_v46 = vld [vmem:[%s1075_s4 + $0x68] sm:$0xff]  }
   0xf   :  { %698 = vmatpush3.bf16.msra.mxu0 %v805_v11  ;;  %v833_v45 = vld [vmem:[%s1075_s4 + $0xa0] sm:$0xff]   ;;  %v835_v47 = vld [vmem:[%s1075_s4 + $0x28] sm:$0xff]   ;;  %v837_v49 = vld [vmem:[%s1075_s4 + $0x70] sm:$0xff]  }
  0x10   :  { %760 = vmatpush3.bf16.msra.mxu1 %v806_v12  ;;  %699 = vmatprep.subr.bf16.mxu0 %v807_v13  ;;  %v836_v48 = vld [vmem:[%s1075_s4 + $0xa8] sm:$0xff]   ;;  %v838_v50 = vld [vmem:[%s1075_s4 + $0x30] sm:$0xff]   ;;  %v840_v52 = vld [vmem:[%s1075_s4 + $0x78] sm:$0xff]  }
  0x11   :  { %761 = vmatprep.subr.bf16.mxu1 %v843_v1  ;;  %v839_v51 = vld [vmem:[%s1075_s4 + $0xb0] sm:$0xff]   ;;  %v841_v53 = vld [vmem:[%s1075_s4 + $0x38] sm:$0xff]   ;;  %v651_v62 = vld [vmem:[%s1076_s2] ss:$0 sm:$0xff] }
  0x12   :  { %v842_v54 = vld [vmem:[%s1075_s4 + $0xb8] sm:$0xff]   ;;  %v652_v3 = vld [vmem:[%s1077_s3] ss:$0 sm:$0xff]  ;;  %vm679_vm3 = vmpackc.low %vm689_vm1, %vm689_vm1 }
  0x13   :  { %700 = vmatpush3.bf16.msra.mxu0 %v808_v14  ;;  %vm684_vm4 = vmpackc.low %vm690_vm2, %vm690_vm2 }
  0x14   :  { %762 = vmatpush3.bf16.msra.mxu1 %v809_v15  ;;  %701 = vmatprep.subr.bf16.mxu0 %v810_v16 }
  0x15   :  { %763 = vmatprep.subr.bf16.mxu1 %v843_v1 }
  0x17   :  { %702 = vmatpush3.bf16.msra.mxu0 %v811_v17 }
  0x18   :  { %764 = vmatpush3.bf16.msra.mxu1 %v812_v18  ;;  %703 = vmatprep.subr.bf16.mxu0 %v813_v19 }
  0x19   :  { %765 = vmatprep.subr.bf16.mxu1 %v843_v1 }
  0x1b   :  { %704 = vmatpush3.bf16.msra.mxu0 %v814_v20  ;;  %v687_v20 = vld [vmem:[%s1078_s5] ss:$0 sm:$0xff] }
  0x1c   :  { %766 = vmatpush3.bf16.msra.mxu1 %v815_v21  ;;  %705 = vmatprep.subr.bf16.mxu0 %v816_v22 }
  0x1d   :  { %767 = vmatprep.subr.bf16.mxu1 %v843_v1 }
  0x1f   :  { %706 = vmatpush3.bf16.msra.mxu0 %v817_v24  ;;  %v688_v24 = vld [vmem:[%s1079_s6] ss:$0 sm:$0xff] }
  0x20   :  { %768 = vmatpush3.bf16.msra.mxu1 %v818_v26  ;;  %722 = vmatprep.subr.bf16.mxu0 %v819_v29 }
  0x21   :  { %773 = vmatprep.subr.bf16.mxu1 %v843_v1 }
  0x22   :  { %258 = vmatmul.mubr.bf16.vlgmr.msra.gmra.mrb[0].mxu0 %v30_v30 }
  0x23   :  { %770 = vmatmul.mubr.bf16.vlgmr.msra.gmra.mrb[0].mxu1 %v32_v32  ;;  %723 = vmatpush3.bf16.msra.mxu0 %v820_v31 }
  0x24   :  { %774 = vmatpush3.bf16.msra.mxu1 %v821_v33  ;;  %724 = vmatprep.subr.bf16.mxu0 %v822_v34 }
  0x25   :  { %775 = vmatprep.subr.bf16.mxu1 %v843_v1  ;;  %789 = vmatprep.mubr.msk.bf16.mxu1 %vm844_vm0, %v843_v1 }
  0x27   :  { %725 = vmatpush3.bf16.msra.mxu0 %v823_v35 }
  0x28   :  { %776 = vmatpush3.bf16.msra.mxu1 %v824_v36  ;;  %726 = vmatprep.subr.bf16.mxu0 %v825_v37 }
  0x29   :  { %777 = vmatprep.subr.bf16.mxu1 %v843_v1 }
  0x2b   :  { %727 = vmatpush3.bf16.msra.mxu0 %v826_v38 }
  0x2c   :  { %778 = vmatpush3.bf16.msra.mxu1 %v827_v39  ;;  %728 = vmatprep.subr.bf16.mxu0 %v828_v40 }
  0x2d   :  { %779 = vmatprep.subr.bf16.mxu1 %v843_v1 }
  0x2f   :  { %729 = vmatpush3.bf16.msra.mxu0 %v829_v41 }
  0x30   :  { %780 = vmatpush3.bf16.msra.mxu1 %v830_v42  ;;  %730 = vmatprep.subr.bf16.mxu0 %v831_v43 }
  0x31   :  { %781 = vmatprep.subr.bf16.mxu1 %v843_v1 }
  0x33   :  { %731 = vmatpush3.bf16.msra.mxu0 %v832_v44 }
  0x34   :  { %782 = vmatpush3.bf16.msra.mxu1 %v833_v45  ;;  %732 = vmatprep.subr.bf16.mxu0 %v834_v46 }
  0x35   :  { %783 = vmatprep.subr.bf16.mxu1 %v843_v1 }
  0x37   :  { %733 = vmatpush3.bf16.msra.mxu0 %v835_v47 }
  0x38   :  { %784 = vmatpush3.bf16.msra.mxu1 %v836_v48  ;;  %734 = vmatprep.subr.bf16.mxu0 %v837_v49 }
  0x39   :  { %785 = vmatprep.subr.bf16.mxu1 %v843_v1 }
  0x3b   :  { %735 = vmatpush3.bf16.msra.mxu0 %v838_v50 }
  0x3c   :  { %786 = vmatpush3.bf16.msra.mxu1 %v839_v51  ;;  %736 = vmatprep.subr.bf16.mxu0 %v840_v52 }
  0x3d   :  { %787 = vmatprep.subr.bf16.mxu1 %v843_v1 }
  0x3f   :  { %737 = vmatpush3.bf16.msra.mxu0 %v841_v53 }
  0x40   :  { %788 = vmatpush3.bf16.msra.mxu1 %v842_v54 }
  0xf5   :  { %v707_v55 = vpop.f32.mrb[0].mxu0 }
  0xf6   :  { %v299_v56 = vpop.f32.mrb[0].mxu1  ;;  %v708_v57 = vpop.f32.mrb[1].mxu0 }
  0xf7   :  { %v709_v59 = vadd.f32 %v708_v57, %v707_v55  ;;  %v771_v60 = vpop.f32.mrb[1].mxu1  ;;  %v710_v61 = vpop.f32.mrb[2].mxu0 }
  0xf8   :  { %v302_v63 = vpop.f32.mrb[2].mxu1  ;;  %v711_v0 = vpop.f32.mrb[3].mxu0 }
  0xf9   :  { %v300_v1 = vadd.f32 %v709_v59, %v299_v56  ;;  %v772_v2 = vpop.f32.mrb[3].mxu1 }
  0xfb   :  { %v312_v5 = vmul.f32 %v651_v62, %v300_v1 }
  0xfd   :  { %v320_v6 = vadd.f32 %v652_v3, %v312_v5 }
  0xff   :  { %v321_v7 = vmax.f32 %v320_v6, 0.0 }
 0x101   :  { %v325_v8 = vrot.slane %v321_v7, 7  ;;  %v328_v9 = vrot.slane %v321_v7, 1  ;;  %v331_v10 = vpack.c.bf16 %v321_v7, %v321_v7 }
 0x103   :  { %557 = vmatprep.mubr.bf16.mxu0 %v331_v10  ;;  %v680_v11 = vpack.c.bf16 %v325_v8, %v325_v8  ;;  %v685_v12 = vpack.c.bf16 %v328_v9, %v328_v9 }
 0x105   :  { %681 = vmatmul.mubr.msk.bf16.vlgmr.msra.gmra.mrb[4].mxu0 %vm679_vm3, %v680_v11  ;;  %790 = vmatmul.mubr.msk.bf16.vlgmr.msra.gmra.mrb[4].mxu1 %vm684_vm4, %v685_v12 }
 0x1d8   :  { %v738_v13 = vpop.f32.mrb[4].mxu0  ;;  %v599_v14 = vpop.f32.mrb[4].mxu1 }
 0x1d9   :  { %v739_v15 = vpop.f32.mrb[5].mxu0  ;;  %v791_v16 = vpop.f32.mrb[5].mxu1 }
 0x1da   :  { %v740_v17 = vadd.f32 %v739_v15, %v738_v13  ;;  %v741_v18 = vpop.f32.mrb[6].mxu0  ;;  %v602_v19 = vpop.f32.mrb[6].mxu1 }
 0x1db   :  { %v742_v21 = vpop.f32.mrb[7].mxu0  ;;  %v792_v22 = vpop.f32.mrb[7].mxu1 }
 0x1dc   :  { %v600_v23 = vadd.f32 %v740_v17, %v599_v14 }
 0x1de   :  { %v612_v25 = vmul.f32 %v687_v20, %v600_v23 }
 0x1e0   :  { %v620_v26 = vadd.f32 %v688_v24, %v612_v25 }
 0x1e2   :  { %v621_v27 = vmax.f32 %v620_v26, 0.0 }
 0x1e4   :  { %622 = vst [vmem:[%s1080_s7] sm:$0xff] %v621_v27 }

</bundles_post_ra>
